<compile_context>
chip_gen: v5e
topology: v5e:2x2
jax: 0.10.0
libtpu: 0.0.40
codegen_flags: <defaults>
</compile_context>

<pallas_src>
import functools

import numpy as np
import jax
import jax.numpy as jnp
from jax import lax
from jax.experimental import pallas as pl
from jax.experimental.pallas import tpu as pltpu

# ----------------------------------------------------------------------------
# Deterministic "parameters": JPEG quantization tables and DCT basis.
# ----------------------------------------------------------------------------

_LUMA_Q = np.array(
    [[16, 11, 10, 16, 24, 40, 51, 61],
     [12, 12, 14, 19, 26, 58, 60, 55],
     [14, 13, 16, 24, 40, 57, 69, 56],
     [14, 17, 22, 29, 51, 87, 80, 62],
     [18, 22, 37, 56, 68, 109, 103, 77],
     [24, 35, 55, 64, 81, 104, 113, 92],
     [49, 64, 78, 87, 103, 121, 120, 101],
     [72, 92, 95, 98, 112, 100, 103, 99]], dtype=np.float32)

_CHROMA_Q = np.array(
    [[17, 18, 24, 47, 99, 99, 99, 99],
     [18, 21, 26, 66, 99, 99, 99, 99],
     [24, 26, 56, 99, 99, 99, 99, 99],
     [47, 66, 99, 99, 99, 99, 99, 99],
     [99, 99, 99, 99, 99, 99, 99, 99],
     [99, 99, 99, 99, 99, 99, 99, 99],
     [99, 99, 99, 99, 99, 99, 99, 99],
     [99, 99, 99, 99, 99, 99, 99, 99]], dtype=np.float32)


def _scaled_q_table(base, quality):
    """libjpeg quality scaling of a base quantization table."""
    quality = int(np.clip(quality, 1, 100))
    scale = 5000.0 / quality if quality < 50 else 200.0 - 2.0 * quality
    q = np.floor((base * scale + 50.0) / 100.0)
    return np.clip(q, 1.0, 255.0).astype(np.float32)


def _dct8_matrix():
    """Orthonormal 8-point DCT-II matrix D: S = D X D^T."""
    n = np.arange(8)
    d = np.cos((2.0 * n[None, :] + 1.0) * n[:, None] * np.pi / 16.0)
    d[0, :] *= np.sqrt(1.0 / 8.0)
    d[1:, :] *= np.sqrt(2.0 / 8.0)
    return d.astype(np.float32)


# ----------------------------------------------------------------------------
# Pallas kernel: JPEG lossy round-trip on one (3, TILE_H, TILE_W) image tile.
# ----------------------------------------------------------------------------

def _jpeg_kernel(x_ref, a_ref, at_ref, b_ref, bt_ref,
                 qy_ref, qyi_ref, qc_ref, qci_ref, o_ref):
    # x_ref:  (3, TH, TW) RGB tile in [0, 1]
    # a_ref/at_ref: (TH, TH) block-diagonal DCT basis and its transpose
    # b_ref/bt_ref: (TW, TW) block-diagonal DCT^T basis and its transpose
    # qy_ref/qc_ref:   (TH, TW) tiled, quality-scaled quantization maps
    # qyi_ref/qci_ref: their elementwise reciprocals (host-precomputed)
    r = x_ref[0] * 255.0
    g = x_ref[1] * 255.0
    b = x_ref[2] * 255.0

    # RGB -> YCbCr (JPEG full-range), luma level-shifted by -128.
    y = 0.299 * r + 0.587 * g + 0.114 * b - 128.0
    cb = -0.168736 * r - 0.331264 * g + 0.5 * b
    cr = 0.5 * r - 0.418688 * g - 0.081312 * b

    A, AT = a_ref[...], at_ref[...]
    B, BT = b_ref[...], bt_ref[...]

    def codec(plane, q, q_inv):
        # Per-8x8-block 2D DCT expressed as two dense matmuls with tile-sized
        # block-diagonal basis matrices (MXU friendly, no divides).
        s = jnp.dot(jnp.dot(A, plane, preferred_element_type=jnp.float32), B,
                    preferred_element_type=jnp.float32)
        s = jnp.round(s * q_inv) * q  # quantize + dequantize
        return jnp.dot(jnp.dot(AT, s, preferred_element_type=jnp.float32), BT,
                       preferred_element_type=jnp.float32)

    qy, qyi = qy_ref[...], qyi_ref[...]
    qc, qci = qc_ref[...], qci_ref[...]

    y2 = codec(y, qy, qyi) + 128.0
    cb2 = codec(cb, qc, qci)
    cr2 = codec(cr, qc, qci)

    # YCbCr -> RGB, clamp, emulate the uint8 round-trip of PIL save/load.
    r2 = y2 + 1.402 * cr2
    g2 = y2 - 0.344136 * cb2 - 0.714136 * cr2
    b2 = y2 + 1.772 * cb2

    inv255 = 1.0 / 255.0
    o_ref[0] = jnp.round(jnp.clip(r2, 0.0, 255.0)) * inv255
    o_ref[1] = jnp.round(jnp.clip(g2, 0.0, 255.0)) * inv255
    o_ref[2] = jnp.round(jnp.clip(b2, 0.0, 255.0)) * inv255


# ----------------------------------------------------------------------------
# Host-side constant construction (cached — built & uploaded once per config).
# ----------------------------------------------------------------------------

@functools.lru_cache(maxsize=None)
def _jpeg_constants(tile_h, tile_w, quality):
    D = _dct8_matrix()
    # Block-diagonal tile-local bases: S = A @ X @ B applies D X D^T per 8x8 block.
    A = np.kron(np.eye(tile_h // 8, dtype=np.float32), D)        # (TH, TH)
    B = np.kron(np.eye(tile_w // 8, dtype=np.float32), D.T)      # (TW, TW)
    qy = np.tile(_scaled_q_table(_LUMA_Q, quality), (tile_h // 8, tile_w // 8))
    qc = np.tile(_scaled_q_table(_CHROMA_Q, quality), (tile_h // 8, tile_w // 8))
    return (jnp.asarray(A), jnp.asarray(np.ascontiguousarray(A.T)),
            jnp.asarray(B), jnp.asarray(np.ascontiguousarray(B.T)),
            jnp.asarray(qy), jnp.asarray(1.0 / qy),
            jnp.asarray(qc), jnp.asarray(1.0 / qc))


def _pick_tile(dim, preferred=(128, 256)):
    # 128 preferred: lane-dense stores, native v5e MXU width, least
    # block-diagonal zero-FLOP waste, tiny double-buffered VMEM on v7x.
    for t in preferred:
        if dim % t == 0:
            return t
    return dim  # full extent fallback (still valid: equals the array dim)


def _jpeg_compress(x, quality):
    _, H, W = x.shape
    th = _pick_tile(H)
    tw = _pick_tile(W)
    consts = _jpeg_constants(th, tw, int(quality))

    img_spec = pl.BlockSpec((3, th, tw), lambda i, j: (0, i, j))

    def const_spec(shape):
        return pl.BlockSpec(shape, lambda i, j: (0, 0))

    in_specs = [
        img_spec,                                     # x
        const_spec((th, th)), const_spec((th, th)),   # A, A^T
        const_spec((tw, tw)), const_spec((tw, tw)),   # B, B^T
        const_spec((th, tw)), const_spec((th, tw)),   # qy, 1/qy
        const_spec((th, tw)), const_spec((th, tw)),   # qc, 1/qc
    ]

    return pl.pallas_call(
        _jpeg_kernel,
        out_shape=jax.ShapeDtypeStruct((3, H, W), jnp.float32),
        grid=(H // th, W // tw),
        in_specs=in_specs,
        out_specs=img_spec,
        compiler_params=pltpu.CompilerParams(
            dimension_semantics=("parallel", "parallel")),
    )(x, *consts)


# ----------------------------------------------------------------------------
# Wrapper: probability gate + compression call.
# ----------------------------------------------------------------------------

def jpeg_artifacts(x, key, quality=50, p=1.0):
    """Approximate JPEGArtifacts.forward for a single CHW float image."""
    C, H, W = x.shape
    assert C == 3 and H % 8 == 0 and W % 8 == 0
    xf = x.astype(jnp.float32)

    if p <= 0.0:
        return xf
    if p >= 1.0:
        # torch.rand(1) < 1.0 is always true -> always compress.
        return _jpeg_compress(xf, quality)

    # torch.rand(1) < p gate: lax.cond skips the whole pipeline when not taken.
    u = jax.random.uniform(key, ())
    return lax.cond(u < p, lambda v: _jpeg_compress(v, quality), lambda v: v, xf)

# TODO(synk): exact PIL/libjpeg behaviour (entropy coding, 4:2:0 chroma
# subsampling, integer DCT, half-away-from-zero rounding) has no clean Pallas
# equivalent; this is the standard differentiable-JPEG approximation.


if __name__ == "__main__":
    key = jax.random.PRNGKey(0)
    k_img, k_gate = jax.random.split(key)

    # Small image: tile == full image dims.
    x_small = jax.random.uniform(k_img, (3, 16, 16), dtype=jnp.float32)
    out_small = jax.block_until_ready(jpeg_artifacts(x_small, k_gate, quality=50, p=1.0))
    assert out_small.shape == (3, 16, 16) and out_small.dtype == jnp.float32
    assert bool(jnp.all(jnp.isfinite(out_small)))
    assert bool(jnp.all(out_small >= 0.0)) and bool(jnp.all(out_small <= 1.0))

    # Larger image: exercises the real (H//128, W//128) grid / tiled path.
    x_big = jax.random.uniform(k_img, (3, 128, 256), dtype=jnp.float32)
    out_big = jax.block_until_ready(jpeg_artifacts(x_big, k_gate, quality=75, p=1.0))
    assert out_big.shape == (3, 128, 256) and out_big.dtype == jnp.float32
    assert bool(jnp.all(jnp.isfinite(out_big)))
    assert bool(jnp.all(out_big >= 0.0)) and bool(jnp.all(out_big <= 1.0))

    print("KERNEL_OK")
</pallas_src>

<mosaic_0001>
module attributes {stable_mosaic.version = 11 : i64} {
  func.func @_jpeg_kernel(%arg0: i32, %arg1: i32, %arg2: memref<3x16x16xf32, #tpu.memory_space<vmem>>, %arg3: memref<16x16xf32, #tpu.memory_space<vmem>>, %arg4: memref<16x16xf32, #tpu.memory_space<vmem>>, %arg5: memref<16x16xf32, #tpu.memory_space<vmem>>, %arg6: memref<16x16xf32, #tpu.memory_space<vmem>>, %arg7: memref<16x16xf32, #tpu.memory_space<vmem>>, %arg8: memref<16x16xf32, #tpu.memory_space<vmem>>, %arg9: memref<16x16xf32, #tpu.memory_space<vmem>>, %arg10: memref<16x16xf32, #tpu.memory_space<vmem>>, %arg11: memref<3x16x16xf32, #tpu.memory_space<vmem>>) attributes {dimension_semantics = [#tpu.dimension_semantics<parallel>, #tpu.dimension_semantics<parallel>], iteration_bounds = array<i64: 1, 1>, scalar_prefetch = 0 : i64, scratch_operands = 0 : i64, tpu.core_type = #tpu.core_type<tc>, window_params = [{transform_indices = @transform_0, window_bounds = array<i64: 3, 16, 16>}, {pipeline_mode = #tpu.pipeline_mode<synchronous>, transform_indices = @transform_1, window_bounds = array<i64: 16, 16>}, {pipeline_mode = #tpu.pipeline_mode<synchronous>, transform_indices = @transform_2, window_bounds = array<i64: 16, 16>}, {pipeline_mode = #tpu.pipeline_mode<synchronous>, transform_indices = @transform_3, window_bounds = array<i64: 16, 16>}, {pipeline_mode = #tpu.pipeline_mode<synchronous>, transform_indices = @transform_4, window_bounds = array<i64: 16, 16>}, {pipeline_mode = #tpu.pipeline_mode<synchronous>, transform_indices = @transform_5, window_bounds = array<i64: 16, 16>}, {pipeline_mode = #tpu.pipeline_mode<synchronous>, transform_indices = @transform_6, window_bounds = array<i64: 16, 16>}, {pipeline_mode = #tpu.pipeline_mode<synchronous>, transform_indices = @transform_7, window_bounds = array<i64: 16, 16>}, {pipeline_mode = #tpu.pipeline_mode<synchronous>, transform_indices = @transform_8, window_bounds = array<i64: 16, 16>}, {transform_indices = @transform_9, window_bounds = array<i64: 3, 16, 16>}]} {
    %c0 = arith.constant 0 : index
    %c0_0 = arith.constant 0 : index
    %c0_1 = arith.constant 0 : index
    %0 = vector.load %arg2[%c0, %c0_0, %c0_1] : memref<3x16x16xf32, #tpu.memory_space<vmem>>, vector<1x16x16xf32>
    %1 = vector.shape_cast %0 : vector<1x16x16xf32> to vector<16x16xf32>
    %cst = arith.constant 2.550000e+02 : f32
    %2 = vector.broadcast %cst : f32 to vector<16x16xf32>
    %3 = arith.mulf %1, %2 : vector<16x16xf32>
    %c1 = arith.constant 1 : index
    %c0_2 = arith.constant 0 : index
    %c0_3 = arith.constant 0 : index
    %4 = vector.load %arg2[%c1, %c0_2, %c0_3] : memref<3x16x16xf32, #tpu.memory_space<vmem>>, vector<1x16x16xf32>
    %5 = vector.shape_cast %4 : vector<1x16x16xf32> to vector<16x16xf32>
    %cst_4 = arith.constant 2.550000e+02 : f32
    %6 = vector.broadcast %cst_4 : f32 to vector<16x16xf32>
    %7 = arith.mulf %5, %6 : vector<16x16xf32>
    %c2 = arith.constant 2 : index
    %c0_5 = arith.constant 0 : index
    %c0_6 = arith.constant 0 : index
    %8 = vector.load %arg2[%c2, %c0_5, %c0_6] : memref<3x16x16xf32, #tpu.memory_space<vmem>>, vector<1x16x16xf32>
    %9 = vector.shape_cast %8 : vector<1x16x16xf32> to vector<16x16xf32>
    %cst_7 = arith.constant 2.550000e+02 : f32
    %10 = vector.broadcast %cst_7 : f32 to vector<16x16xf32>
    %11 = arith.mulf %9, %10 : vector<16x16xf32>
    %cst_8 = arith.constant 2.990000e-01 : f32
    %12 = vector.broadcast %cst_8 : f32 to vector<16x16xf32>
    %13 = arith.mulf %12, %3 : vector<16x16xf32>
    %cst_9 = arith.constant 5.870000e-01 : f32
    %14 = vector.broadcast %cst_9 : f32 to vector<16x16xf32>
    %15 = arith.mulf %14, %7 : vector<16x16xf32>
    %16 = arith.addf %13, %15 : vector<16x16xf32>
    %cst_10 = arith.constant 1.140000e-01 : f32
    %17 = vector.broadcast %cst_10 : f32 to vector<16x16xf32>
    %18 = arith.mulf %17, %11 : vector<16x16xf32>
    %19 = arith.addf %16, %18 : vector<16x16xf32>
    %cst_11 = arith.constant 1.280000e+02 : f32
    %20 = vector.broadcast %cst_11 : f32 to vector<16x16xf32>
    %21 = arith.subf %19, %20 : vector<16x16xf32>
    %cst_12 = arith.constant -1.687360e-01 : f32
    %22 = vector.broadcast %cst_12 : f32 to vector<16x16xf32>
    %23 = arith.mulf %22, %3 : vector<16x16xf32>
    %cst_13 = arith.constant 3.312640e-01 : f32
    %24 = vector.broadcast %cst_13 : f32 to vector<16x16xf32>
    %25 = arith.mulf %24, %7 : vector<16x16xf32>
    %26 = arith.subf %23, %25 : vector<16x16xf32>
    %cst_14 = arith.constant 5.000000e-01 : f32
    %27 = vector.broadcast %cst_14 : f32 to vector<16x16xf32>
    %28 = arith.mulf %27, %11 : vector<16x16xf32>
    %29 = arith.addf %26, %28 : vector<16x16xf32>
    %cst_15 = arith.constant 5.000000e-01 : f32
    %30 = vector.broadcast %cst_15 : f32 to vector<16x16xf32>
    %31 = arith.mulf %30, %3 : vector<16x16xf32>
    %cst_16 = arith.constant 4.186880e-01 : f32
    %32 = vector.broadcast %cst_16 : f32 to vector<16x16xf32>
    %33 = arith.mulf %32, %7 : vector<16x16xf32>
    %34 = arith.subf %31, %33 : vector<16x16xf32>
    %cst_17 = arith.constant 8.131200e-02 : f32
    %35 = vector.broadcast %cst_17 : f32 to vector<16x16xf32>
    %36 = arith.mulf %35, %11 : vector<16x16xf32>
    %37 = arith.subf %34, %36 : vector<16x16xf32>
    %c0_18 = arith.constant 0 : index
    %c0_19 = arith.constant 0 : index
    %38 = vector.load %arg3[%c0_18, %c0_19] : memref<16x16xf32, #tpu.memory_space<vmem>>, vector<16x16xf32>
    %c0_20 = arith.constant 0 : index
    %c0_21 = arith.constant 0 : index
    %39 = vector.load %arg4[%c0_20, %c0_21] : memref<16x16xf32, #tpu.memory_space<vmem>>, vector<16x16xf32>
    %c0_22 = arith.constant 0 : index
    %c0_23 = arith.constant 0 : index
    %40 = vector.load %arg5[%c0_22, %c0_23] : memref<16x16xf32, #tpu.memory_space<vmem>>, vector<16x16xf32>
    %c0_24 = arith.constant 0 : index
    %c0_25 = arith.constant 0 : index
    %41 = vector.load %arg6[%c0_24, %c0_25] : memref<16x16xf32, #tpu.memory_space<vmem>>, vector<16x16xf32>
    %c0_26 = arith.constant 0 : index
    %c0_27 = arith.constant 0 : index
    %42 = vector.load %arg7[%c0_26, %c0_27] : memref<16x16xf32, #tpu.memory_space<vmem>>, vector<16x16xf32>
    %c0_28 = arith.constant 0 : index
    %c0_29 = arith.constant 0 : index
    %43 = vector.load %arg8[%c0_28, %c0_29] : memref<16x16xf32, #tpu.memory_space<vmem>>, vector<16x16xf32>
    %c0_30 = arith.constant 0 : index
    %c0_31 = arith.constant 0 : index
    %44 = vector.load %arg9[%c0_30, %c0_31] : memref<16x16xf32, #tpu.memory_space<vmem>>, vector<16x16xf32>
    %c0_32 = arith.constant 0 : index
    %c0_33 = arith.constant 0 : index
    %45 = vector.load %arg10[%c0_32, %c0_33] : memref<16x16xf32, #tpu.memory_space<vmem>>, vector<16x16xf32>
    %cst_34 = arith.constant dense<0.000000e+00> : vector<16x16xf32>
    %46 = tpu.matmul %38, %21, %cst_34 {dimension_numbers = #tpu.dot_dimension_numbers<[1], [0], [0], [1], [0, 0, 1, 1], [], []>} : vector<16x16xf32>, vector<16x16xf32>, vector<16x16xf32> -> vector<16x16xf32>
    %cst_35 = arith.constant dense<0.000000e+00> : vector<16x16xf32>
    %47 = tpu.matmul %46, %40, %cst_35 {dimension_numbers = #tpu.dot_dimension_numbers<[1], [0], [0], [1], [0, 0, 1, 1], [], []>} : vector<16x16xf32>, vector<16x16xf32>, vector<16x16xf32> -> vector<16x16xf32>
    %48 = arith.mulf %47, %43 : vector<16x16xf32>
    %49 = math.roundeven %48 : vector<16x16xf32>
    %50 = arith.mulf %49, %42 : vector<16x16xf32>
    %cst_36 = arith.constant dense<0.000000e+00> : vector<16x16xf32>
    %51 = tpu.matmul %39, %50, %cst_36 {dimension_numbers = #tpu.dot_dimension_numbers<[1], [0], [0], [1], [0, 0, 1, 1], [], []>} : vector<16x16xf32>, vector<16x16xf32>, vector<16x16xf32> -> vector<16x16xf32>
    %cst_37 = arith.constant dense<0.000000e+00> : vector<16x16xf32>
    %52 = tpu.matmul %51, %41, %cst_37 {dimension_numbers = #tpu.dot_dimension_numbers<[1], [0], [0], [1], [0, 0, 1, 1], [], []>} : vector<16x16xf32>, vector<16x16xf32>, vector<16x16xf32> -> vector<16x16xf32>
    %cst_38 = arith.constant 1.280000e+02 : f32
    %53 = vector.broadcast %cst_38 : f32 to vector<16x16xf32>
    %54 = arith.addf %52, %53 : vector<16x16xf32>
    %cst_39 = arith.constant dense<0.000000e+00> : vector<16x16xf32>
    %55 = tpu.matmul %38, %29, %cst_39 {dimension_numbers = #tpu.dot_dimension_numbers<[1], [0], [0], [1], [0, 0, 1, 1], [], []>} : vector<16x16xf32>, vector<16x16xf32>, vector<16x16xf32> -> vector<16x16xf32>
    %cst_40 = arith.constant dense<0.000000e+00> : vector<16x16xf32>
    %56 = tpu.matmul %55, %40, %cst_40 {dimension_numbers = #tpu.dot_dimension_numbers<[1], [0], [0], [1], [0, 0, 1, 1], [], []>} : vector<16x16xf32>, vector<16x16xf32>, vector<16x16xf32> -> vector<16x16xf32>
    %57 = arith.mulf %56, %45 : vector<16x16xf32>
    %58 = math.roundeven %57 : vector<16x16xf32>
    %59 = arith.mulf %58, %44 : vector<16x16xf32>
    %cst_41 = arith.constant dense<0.000000e+00> : vector<16x16xf32>
    %60 = tpu.matmul %39, %59, %cst_41 {dimension_numbers = #tpu.dot_dimension_numbers<[1], [0], [0], [1], [0, 0, 1, 1], [], []>} : vector<16x16xf32>, vector<16x16xf32>, vector<16x16xf32> -> vector<16x16xf32>
    %cst_42 = arith.constant dense<0.000000e+00> : vector<16x16xf32>
    %61 = tpu.matmul %60, %41, %cst_42 {dimension_numbers = #tpu.dot_dimension_numbers<[1], [0], [0], [1], [0, 0, 1, 1], [], []>} : vector<16x16xf32>, vector<16x16xf32>, vector<16x16xf32> -> vector<16x16xf32>
    %cst_43 = arith.constant dense<0.000000e+00> : vector<16x16xf32>
    %62 = tpu.matmul %38, %37, %cst_43 {dimension_numbers = #tpu.dot_dimension_numbers<[1], [0], [0], [1], [0, 0, 1, 1], [], []>} : vector<16x16xf32>, vector<16x16xf32>, vector<16x16xf32> -> vector<16x16xf32>
    %cst_44 = arith.constant dense<0.000000e+00> : vector<16x16xf32>
    %63 = tpu.matmul %62, %40, %cst_44 {dimension_numbers = #tpu.dot_dimension_numbers<[1], [0], [0], [1], [0, 0, 1, 1], [], []>} : vector<16x16xf32>, vector<16x16xf32>, vector<16x16xf32> -> vector<16x16xf32>
    %64 = arith.mulf %63, %45 : vector<16x16xf32>
    %65 = math.roundeven %64 : vector<16x16xf32>
    %66 = arith.mulf %65, %44 : vector<16x16xf32>
    %cst_45 = arith.constant dense<0.000000e+00> : vector<16x16xf32>
    %67 = tpu.matmul %39, %66, %cst_45 {dimension_numbers = #tpu.dot_dimension_numbers<[1], [0], [0], [1], [0, 0, 1, 1], [], []>} : vector<16x16xf32>, vector<16x16xf32>, vector<16x16xf32> -> vector<16x16xf32>
    %cst_46 = arith.constant dense<0.000000e+00> : vector<16x16xf32>
    %68 = tpu.matmul %67, %41, %cst_46 {dimension_numbers = #tpu.dot_dimension_numbers<[1], [0], [0], [1], [0, 0, 1, 1], [], []>} : vector<16x16xf32>, vector<16x16xf32>, vector<16x16xf32> -> vector<16x16xf32>
    %cst_47 = arith.constant 1.402000e+00 : f32
    %69 = vector.broadcast %cst_47 : f32 to vector<16x16xf32>
    %70 = arith.mulf %69, %68 : vector<16x16xf32>
    %71 = arith.addf %54, %70 : vector<16x16xf32>
    %cst_48 = arith.constant 3.441360e-01 : f32
    %72 = vector.broadcast %cst_48 : f32 to vector<16x16xf32>
    %73 = arith.mulf %72, %61 : vector<16x16xf32>
    %74 = arith.subf %54, %73 : vector<16x16xf32>
    %cst_49 = arith.constant 7.141360e-01 : f32
    %75 = vector.broadcast %cst_49 : f32 to vector<16x16xf32>
    %76 = arith.mulf %75, %68 : vector<16x16xf32>
    %77 = arith.subf %74, %76 : vector<16x16xf32>
    %cst_50 = arith.constant 1.772000e+00 : f32
    %78 = vector.broadcast %cst_50 : f32 to vector<16x16xf32>
    %79 = arith.mulf %78, %61 : vector<16x16xf32>
    %80 = arith.addf %54, %79 : vector<16x16xf32>
    %cst_51 = arith.constant 0.000000e+00 : f32
    %cst_52 = arith.constant 2.550000e+02 : f32
    %81 = vector.broadcast %cst_51 : f32 to vector<16x16xf32>
    %82 = arith.maximumf %81, %71 : vector<16x16xf32>
    %83 = vector.broadcast %cst_52 : f32 to vector<16x16xf32>
    %84 = arith.minimumf %83, %82 : vector<16x16xf32>
    %85 = math.roundeven %84 : vector<16x16xf32>
    %cst_53 = arith.constant 0.00392156886 : f32
    %86 = vector.broadcast %cst_53 : f32 to vector<16x16xf32>
    %87 = arith.mulf %85, %86 : vector<16x16xf32>
    %c0_54 = arith.constant 0 : index
    %c0_55 = arith.constant 0 : index
    %c0_56 = arith.constant 0 : index
    %88 = vector.load %arg11[%c0_54, %c0_55, %c0_56] : memref<3x16x16xf32, #tpu.memory_space<vmem>>, vector<1x16x16xf32>
    %89 = vector.shape_cast %88 : vector<1x16x16xf32> to vector<16x16xf32>
    %90 = vector.shape_cast %87 : vector<16x16xf32> to vector<1x16x16xf32>
    tpu.vector_store %arg11[%c0_54, %c0_55, %c0_56], %90 {strides = array<i32>} : memref<3x16x16xf32, #tpu.memory_space<vmem>>, vector<1x16x16xf32>,
    %cst_57 = arith.constant 0.000000e+00 : f32
    %cst_58 = arith.constant 2.550000e+02 : f32
    %91 = vector.broadcast %cst_57 : f32 to vector<16x16xf32>
    %92 = arith.maximumf %91, %77 : vector<16x16xf32>
    %93 = vector.broadcast %cst_58 : f32 to vector<16x16xf32>
    %94 = arith.minimumf %93, %92 : vector<16x16xf32>
    %95 = math.roundeven %94 : vector<16x16xf32>
    %cst_59 = arith.constant 0.00392156886 : f32
    %96 = vector.broadcast %cst_59 : f32 to vector<16x16xf32>
    %97 = arith.mulf %95, %96 : vector<16x16xf32>
    %c1_60 = arith.constant 1 : index
    %c0_61 = arith.constant 0 : index
    %c0_62 = arith.constant 0 : index
    %98 = vector.load %arg11[%c1_60, %c0_61, %c0_62] : memref<3x16x16xf32, #tpu.memory_space<vmem>>, vector<1x16x16xf32>
    %99 = vector.shape_cast %98 : vector<1x16x16xf32> to vector<16x16xf32>
    %100 = vector.shape_cast %97 : vector<16x16xf32> to vector<1x16x16xf32>
    tpu.vector_store %arg11[%c1_60, %c0_61, %c0_62], %100 {strides = array<i32>} : memref<3x16x16xf32, #tpu.memory_space<vmem>>, vector<1x16x16xf32>,
    %cst_63 = arith.constant 0.000000e+00 : f32
    %cst_64 = arith.constant 2.550000e+02 : f32
    %101 = vector.broadcast %cst_63 : f32 to vector<16x16xf32>
    %102 = arith.maximumf %101, %80 : vector<16x16xf32>
    %103 = vector.broadcast %cst_64 : f32 to vector<16x16xf32>
    %104 = arith.minimumf %103, %102 : vector<16x16xf32>
    %105 = math.roundeven %104 : vector<16x16xf32>
    %cst_65 = arith.constant 0.00392156886 : f32
    %106 = vector.broadcast %cst_65 : f32 to vector<16x16xf32>
    %107 = arith.mulf %105, %106 : vector<16x16xf32>
    %c2_66 = arith.constant 2 : index
    %c0_67 = arith.constant 0 : index
    %c0_68 = arith.constant 0 : index
    %108 = vector.load %arg11[%c2_66, %c0_67, %c0_68] : memref<3x16x16xf32, #tpu.memory_space<vmem>>, vector<1x16x16xf32>
    %109 = vector.shape_cast %108 : vector<1x16x16xf32> to vector<16x16xf32>
    %110 = vector.shape_cast %107 : vector<16x16xf32> to vector<1x16x16xf32>
    tpu.vector_store %arg11[%c2_66, %c0_67, %c0_68], %110 {strides = array<i32>} : memref<3x16x16xf32, #tpu.memory_space<vmem>>, vector<1x16x16xf32>,
    return
  }
  func.func @transform_0(%arg0: i32, %arg1: i32) -> (i32, i32, i32) {
    %c0_i32 = arith.constant 0 : i32
    %c0_i32_0 = arith.constant 0 : i32
    return %c0_i32, %arg0, %arg1 : i32, i32, i32
  }
  func.func @transform_1(%arg0: i32, %arg1: i32) -> (i32, i32) {
    %c0_i32 = arith.constant 0 : i32
    %c0_i32_0 = arith.constant 0 : i32
    %c0_i32_1 = arith.constant 0 : i32
    return %c0_i32, %c0_i32_0 : i32, i32
  }
  func.func @transform_2(%arg0: i32, %arg1: i32) -> (i32, i32) {
    %c0_i32 = arith.constant 0 : i32
    %c0_i32_0 = arith.constant 0 : i32
    %c0_i32_1 = arith.constant 0 : i32
    return %c0_i32, %c0_i32_0 : i32, i32
  }
  func.func @transform_3(%arg0: i32, %arg1: i32) -> (i32, i32) {
    %c0_i32 = arith.constant 0 : i32
    %c0_i32_0 = arith.constant 0 : i32
    %c0_i32_1 = arith.constant 0 : i32
    return %c0_i32, %c0_i32_0 : i32, i32
  }
  func.func @transform_4(%arg0: i32, %arg1: i32) -> (i32, i32) {
    %c0_i32 = arith.constant 0 : i32
    %c0_i32_0 = arith.constant 0 : i32
    %c0_i32_1 = arith.constant 0 : i32
    return %c0_i32, %c0_i32_0 : i32, i32
  }
  func.func @transform_5(%arg0: i32, %arg1: i32) -> (i32, i32) {
    %c0_i32 = arith.constant 0 : i32
    %c0_i32_0 = arith.constant 0 : i32
    %c0_i32_1 = arith.constant 0 : i32
    return %c0_i32, %c0_i32_0 : i32, i32
  }
  func.func @transform_6(%arg0: i32, %arg1: i32) -> (i32, i32) {
    %c0_i32 = arith.constant 0 : i32
    %c0_i32_0 = arith.constant 0 : i32
    %c0_i32_1 = arith.constant 0 : i32
    return %c0_i32, %c0_i32_0 : i32, i32
  }
  func.func @transform_7(%arg0: i32, %arg1: i32) -> (i32, i32) {
    %c0_i32 = arith.constant 0 : i32
    %c0_i32_0 = arith.constant 0 : i32
    %c0_i32_1 = arith.constant 0 : i32
    return %c0_i32, %c0_i32_0 : i32, i32
  }
  func.func @transform_8(%arg0: i32, %arg1: i32) -> (i32, i32) {
    %c0_i32 = arith.constant 0 : i32
    %c0_i32_0 = arith.constant 0 : i32
    %c0_i32_1 = arith.constant 0 : i32
    return %c0_i32, %c0_i32_0 : i32, i32
  }
  func.func @transform_9(%arg0: i32, %arg1: i32) -> (i32, i32, i32) {
    %c0_i32 = arith.constant 0 : i32
    %c0_i32_0 = arith.constant 0 : i32
    return %c0_i32, %arg0, %arg1 : i32, i32, i32
  }
}

</mosaic_0001>

<bundles_post_ra>
// kernel: tpu_custom_call.1
= control target key start
LH: loop header
LB: loop body
LE: loop exit
PB: predicated region body
PF: predicated region fallthrough
CT: control target
= control target key end

     0   :  { %14 = vsyncpa [#allocation3], 0  ;;  %s1187_s0 = inlined_call_operand.hbm [shape: f32[3,16,16], index: 0, kind: input, shape index: {}]   ;;  %s1188_s1 = inlined_call_operand.hbm [shape: f32[16,16], index: 1, kind: input, shape index: {}]   ;;  %s1189_s2 = inlined_call_operand.hbm [shape: f32[16,16], index: 2, kind: input, shape index: {}]   ;;  %s1190_s3 = inlined_call_operand.hbm [shape: f32[16,16], index: 3, kind: input, shape index: {}]   ;;  %s1191_s4 = inlined_call_operand.hbm [shape: f32[16,16], index: 4, kind: input, shape index: {}]   ;;  %s1192_s5 = inlined_call_operand.hbm [shape: f32[16,16], index: 5, kind: input, shape index: {}]   ;;  %s1193_s6 = inlined_call_operand.hbm [shape: f32[16,16], index: 6, kind: input, shape index: {}]   ;;  %s1194_s7 = inlined_call_operand.hbm [shape: f32[16,16], index: 7, kind: input, shape index: {}]   ;;  %s1195_s8 = inlined_call_operand.hbm [shape: f32[16,16], index: 8, kind: input, shape index: {}]   ;;  %s1196_s9 = inlined_call_operand.hbm [shape: f32[3,16,16], index: 9, kind: output, shape index: {}]  }
   0x1   :  { %15 = vsyncpa [#allocation6], 0 }
   0x2   :  { %16 = vsyncpa [#allocation9], 0 }
   0x3   :  { %17 = vsyncpa [#allocation12], 0 }
   0x4   :  { %18 = vsyncpa [#allocation15], 0 }
   0x5   :  { %19 = vsyncpa [#allocation4], 0  ;;  %s37_s11 = sshll.u32 %s1188_s1, 4  ;;  %s1035_s12 = smov [#allocation5]   ;;  %s38_s11 = int_to_ptr.hbm [resolvable:$true] %s37_s11 }
   0x6   :  { %s39_s13 = sshll.u32 %s1035_s12, 4  ;;  %s63_s16 = sshll.u32 %s1190_s3, 4  ;;  %s40_s13 = int_to_ptr.vmem [resolvable:$true] %s39_s13  ;;  %s64_s16 = int_to_ptr.hbm [resolvable:$true] %s63_s16 }
   0x7   :  { %s1036_s17 = smov 128   ;;  %s1037_s18 = smov 8  }
   0x8   :  { %45 = dma.hbm_to_vmem [thread:$0]  %s38_s11, 256, %s40_s13, [#allocation6], %s1036_s17, %s1036_s17, %s1037_s18  }
   0x9   :  { %s1038_s19 = smov [#allocation8]   ;;  %s89_s1 = sshll.u32 %s1192_s5, 4  ;;  %s90_s1 = int_to_ptr.hbm [resolvable:$true] %s89_s1 }
   0xa   :  { %s65_s20 = sshll.u32 %s1038_s19, 4  ;;  %s115_s24 = sshll.u32 %s1194_s7, 4  ;;  %s66_s20 = int_to_ptr.vmem [resolvable:$true] %s65_s20  ;;  %s116_s24 = int_to_ptr.hbm [resolvable:$true] %s115_s24 }
   0xb   :  { %71 = dma.hbm_to_vmem [thread:$0]  %s64_s16, 256, %s66_s20, [#allocation9], %s1036_s17, %s1036_s17, %s1037_s18  }
   0xc   :  { %s1039_s25 = smov [#allocation11]   ;;  %s1040_s27 = smov [#allocation14]  }
   0xd   :  { %s91_s26 = sshll.u32 %s1039_s25, 4  ;;  %s117_s5 = sshll.u32 %s1040_s27, 4  ;;  %s92_s26 = int_to_ptr.vmem [resolvable:$true] %s91_s26  ;;  %s118_s5 = int_to_ptr.vmem [resolvable:$true] %s117_s5 }
   0xe   :  { %97 = dma.hbm_to_vmem [thread:$0]  %s90_s1, 256, %s92_s26, [#allocation12], %s1036_s17, %s1036_s17, %s1037_s18  }
   0xf   :  { %s24_s30 = sshll.u32 %s1187_s0, 4  ;;  %s50_s11 = sshll.u32 %s1189_s2, 4  ;;  %s25_s30 = int_to_ptr.hbm [resolvable:$true] %s24_s30  ;;  %s51_s11 = int_to_ptr.hbm [resolvable:$true] %s50_s11 }
  0x10   :  { %123 = dma.hbm_to_vmem [thread:$0]  %s116_s24, 256, %s118_s5, [#allocation15], %s1036_s17, %s1036_s17, %s1037_s18  }
  0x11   :  { %s1041_s12 = smov [#allocation2]   ;;  %s1042_s14 = smov [#allocation7]  }
  0x12   :  { %s26_s13 = sshll.u32 %s1041_s12, 4  ;;  %s52_s0 = sshll.u32 %s1042_s14, 4  ;;  %s27_s13 = int_to_ptr.vmem [resolvable:$true] %s26_s13  ;;  %s53_s0 = int_to_ptr.vmem [resolvable:$true] %s52_s0 }
  0x13   :  { %32 = dma.hbm_to_vmem [thread:$0]  %s25_s30, 768, %s27_s13, [#allocation3], %s1036_s17, %s1036_s17, %s1037_s18  }
  0x14   :  { %s76_s19 = sshll.u32 %s1191_s4, 4  ;;  %s102_s21 = sshll.u32 %s1193_s6, 4  ;;  %s77_s19 = int_to_ptr.hbm [resolvable:$true] %s76_s19  ;;  %s103_s21 = int_to_ptr.hbm [resolvable:$true] %s102_s21 }
  0x15   :  { %58 = dma.hbm_to_vmem [thread:$0]  %s51_s11, 256, %s53_s0, [#allocation6], %s1036_s17, %s1036_s17, %s1037_s18  }
  0x16   :  { %s1043_s22 = smov [#allocation10]   ;;  %s1044_s3 = smov [#allocation13]  }
  0x17   :  { %s78_s1 = sshll.u32 %s1043_s22, 4  ;;  %s104_s4 = sshll.u32 %s1044_s3, 4  ;;  %s79_s1 = int_to_ptr.vmem [resolvable:$true] %s78_s1  ;;  %s105_s4 = int_to_ptr.vmem [resolvable:$true] %s104_s4 }
  0x18   :  { %84 = dma.hbm_to_vmem [thread:$0]  %s77_s19, 256, %s79_s1, [#allocation9], %s1036_s17, %s1036_s17, %s1037_s18  }
  0x19   :  { %s128_s25 = sshll.u32 %s1195_s8, 4  ;;  %s1045_s6 = smov [#allocation16]   ;;  %s129_s25 = int_to_ptr.hbm [resolvable:$true] %s128_s25 }
  0x1a   :  { %110 = dma.hbm_to_vmem [thread:$0]  %s103_s21, 256, %s105_s4, [#allocation12], %s1036_s17, %s1036_s17, %s1037_s18  }
  0x1b   :  { %s130_s26 = sshll.u32 %s1045_s6, 4  ;;  %s131_s26 = int_to_ptr.vmem [resolvable:$true] %s130_s26 }
  0x1c   :  { %136 = dma.hbm_to_vmem [thread:$0]  %s129_s25, 256, %s131_s26, [#allocation15], %s1036_s17, %s1036_s17, %s1037_s18  }
  0x1d   :  { %1023 = dma.done.wait [#allocation3], 768  }
  0x1e   :  { %1024 = vsyncadd [#allocation3], 4294966528 }
  0x1f   :  { %1025 = dma.done.wait [#allocation6], 512  }
  0x20   :  { %1026 = vsyncadd [#allocation6], 4294966784 }
  0x21   :  { %1027 = dma.done.wait [#allocation9], 512  }
  0x22   :  { %1028 = vsyncadd [#allocation9], 4294966784 }
  0x23   :  { %1029 = dma.done.wait [#allocation12], 512  }
  0x24   :  { %1030 = vsyncadd [#allocation12], 4294966784 }
  0x25   :  { %1031 = dma.done.wait [#allocation15], 512  }
  0x26   :  { %1032 = vsyncadd [#allocation15], 4294966784  ;;  %v174_v0 = vld [vmem:[#allocation2 + $0x8] sm:$0xff]  ;;  %v179_v1 = vld [vmem:[#allocation2 + $0x18] sm:$0xff]  ;;  %vm235_vm0 = vcmask 130048   ;;  %s1046_s8 = smov [#allocation17]  }
  0x27   :  { %v184_v2 = vld [vmem:[#allocation2 + $0x28] sm:$0xff]  ;;  %v176_v3 = vmul.f32 255.0, %v174_v0  ;;  %v181_v4 = vmul.f32 255.0, %v179_v1  ;;  %v173_v6 = vld [vmem:[#allocation2] sm:$0xff]  ;;  %v178_v7 = vld [vmem:[#allocation2 + $0x10] sm:$0xff]  ;;  %s630_s27 = sshll.u32 %s1046_s8, 4  ;;  %s631_s27 = int_to_ptr.vmem [resolvable:$true] %s630_s27 }
  0x28   :  { %v186_v5 = vmul.f32 255.0, %v184_v2  ;;  %v183_v8 = vld [vmem:[#allocation2 + $0x20] sm:$0xff]  ;;  %v175_v9 = vmul.f32 255.0, %v173_v6  ;;  %v180_v10 = vmul.f32 255.0, %v178_v7  ;;  %v219_v38 = vld [vmem:[#allocation5] sm:$0xff]  ;;  %v220_v45 = vld [vmem:[#allocation5 + $0x8] sm:$0xff] }
  0x29   :  { %v185_v11 = vmul.f32 255.0, %v183_v8  ;;  %v188_v12 = vmul.f32 0.299, %v176_v3  ;;  %v190_v13 = vmul.f32 0.587, %v181_v4  ;;  %v210_v27 = vmul.f32 0.5, %v176_v3 }
  0x2a   :  { %v194_v14 = vmul.f32 0.114, %v186_v5  ;;  %v187_v15 = vmul.f32 0.299, %v175_v9  ;;  %v189_v16 = vmul.f32 0.587, %v180_v10 }
  0x2b   :  { %v193_v17 = vmul.f32 0.114, %v185_v11  ;;  %v192_v18 = vadd.f32 %v190_v13, %v188_v12  ;;  %v200_v19 = vmul.f32 -0.168736, %v176_v3  ;;  %v202_v20 = vmul.f32 0.331264, %v181_v4 }
  0x2c   :  { %v191_v21 = vadd.f32 %v189_v16, %v187_v15  ;;  %v206_v22 = vmul.f32 0.5, %v186_v5  ;;  %v199_v23 = vmul.f32 -0.168736, %v175_v9  ;;  %v201_v24 = vmul.f32 0.331264, %v180_v10  ;;  %v224_v46 = vld [vmem:[#allocation8 + $0x8] sm:$0xff] }
  0x2d   :  { %v196_v25 = vadd.f32 %v194_v14, %v192_v18  ;;  %v204_v26 = vsub.f32 %v200_v19, %v202_v20  ;;  %v212_v28 = vmul.f32 0.418688, %v181_v4  ;;  %v209_v30 = vmul.f32 0.5, %v175_v9  ;;  %285 = vmatpush.msra.mxu1 %v224_v46  ;;  %v223_v47 = vld [vmem:[#allocation8] sm:$0xff]  ;;  %v229_v54 = vld [vmem:[#allocation13] sm:$0xff]  ;;  %v230_v58 = vld [vmem:[#allocation13 + $0x8] sm:$0xff] }
  0x2e   :  { %v195_v29 = vadd.f32 %v193_v17, %v191_v21  ;;  %v203_v32 = vsub.f32 %v199_v23, %v201_v24  ;;  %v205_v33 = vmul.f32 0.5, %v185_v11  ;;  %v211_v34 = vmul.f32 0.418688, %v180_v10  ;;  %v233_v2 = vld [vmem:[#allocation16] sm:$0xff]  ;;  %v228_v10 = vld [vmem:[#allocation11 + $0x8] sm:$0xff]  ;;  %v227_v14 = vld [vmem:[#allocation11] sm:$0xff] }
  0x2f   :  { %v650_v31 = vadd.f32 -128.0, %v196_v25  ;;  %v214_v36 = vsub.f32 %v210_v27, %v212_v28  ;;  %v216_v37 = vmul.f32 0.081312, %v186_v5  ;;  %v208_v39 = vadd.f32 %v206_v22, %v204_v26  ;;  %286 = vmatpush.msra.mxu1 %v223_v47  ;;  %v234_v18 = vld [vmem:[#allocation16 + $0x8] sm:$0xff]  ;;  %v221_v19 = vld [vmem:[#allocation7] sm:$0xff]  ;;  %s632_s29 = sshll.u32 %s1196_s9, 4  ;;  %s633_s29 = int_to_ptr.hbm [resolvable:$true] %s632_s29 }
  0x30   :  { %v649_v35 = vadd.f32 -128.0, %v195_v29  ;;  %v213_v40 = vsub.f32 %v209_v30, %v211_v34  ;;  %v215_v41 = vmul.f32 0.081312, %v185_v11  ;;  %v207_v42 = vadd.f32 %v205_v33, %v203_v32  ;;  %v222_v27 = vld [vmem:[#allocation7 + $0x8] sm:$0xff] }
  0x31   :  { %256 = vmatpush.msra.mxu0 %v650_v31  ;;  %v218_v43 = vsub.f32 %v214_v36, %v216_v37  ;;  %401 = vmatpush.msrb.mxu1 %v224_v46  ;;  %v226_v37 = vld [vmem:[#allocation10 + $0x8] sm:$0xff] }
  0x32   :  { %v217_v44 = vsub.f32 %v213_v40, %v215_v41  ;;  %349 = vmatpush.msra.mxu3 %v226_v37  ;;  %v231_v40 = vld [vmem:[#allocation14] sm:$0xff] }
  0x33   :  { %257 = vmatpush.msra.mxu0 %v649_v35  ;;  %402 = vmatpush.msrb.mxu1 %v223_v47  ;;  %v232_v35 = vld [vmem:[#allocation14 + $0x8] sm:$0xff] }
  0x34   :  { %651 = vmatmul.msk.f32.vlgmr.msra.gmra.mxu0 %vm235_vm0, %v219_v38 }
  0x35   :  { %372 = vmatpush.msrb.mxu0 %v208_v39 }
  0x37   :  { %373 = vmatpush.msrb.mxu0 %v207_v42 }
  0x39   :  { %482 = vmatpush.msra.mxu0 %v218_v43 }
  0x3b   :  { %483 = vmatpush.msra.mxu0 %v217_v44 }
  0x3c   :  { %652 = vmatmul.msk.f32.gmra.mxu0 %vm235_vm0, %v220_v45 }
  0x44   :  { %659 = vmatmul.msk.f32.vlgmr.msrb.gmra.mxu0 %vm235_vm0, %v219_v38 }
  0x4c   :  { %660 = vmatmul.msk.f32.gmra.mxu0 %vm235_vm0, %v220_v45 }
  0x54   :  { %667 = vmatmul.msk.f32.vlgmr.msra.gmra.mxu0 %vm235_vm0, %v219_v38 }
  0x5c   :  { %668 = vmatmul.msk.f32.gmra.mxu0 %vm235_vm0, %v220_v45 }
  0xb1   :  { %v259_v48 = vpop.f32.mrf.mxu0 }
  0xb2   :  { %653 = vmatmul.msk.f32.vlgmr.msra.gmra.mxu1 %vm235_vm0, %v259_v48 }
  0xb3   :  { %511 = vmatpush.msra.mxu1 %v224_v46 }
  0xb5   :  { %512 = vmatpush.msra.mxu1 %v223_v47 }
  0xb9   :  { %v262_v49 = vpop.f32.mrf.mxu0 }
  0xba   :  { %654 = vmatmul.msk.f32.gmra.mxu1 %vm235_vm0, %v262_v49 }
  0xc1   :  { %v375_v50 = vpop.f32.mrf.mxu0 }
  0xc2   :  { %661 = vmatmul.msk.f32.vlgmr.msrb.gmra.mxu1 %vm235_vm0, %v375_v50 }
  0xc9   :  { %v378_v51 = vpop.f32.mrf.mxu0 }
  0xca   :  { %662 = vmatmul.msk.f32.gmra.mxu1 %vm235_vm0, %v378_v51 }
  0xd1   :  { %v485_v52 = vpop.f32.mrf.mxu0 }
  0xd2   :  { %669 = vmatmul.msk.f32.vlgmr.msra.gmra.mxu1 %vm235_vm0, %v485_v52 }
  0xd9   :  { %v488_v53 = vpop.f32.mrf.mxu0 }
  0xda   :  { %670 = vmatmul.msk.f32.gmra.mxu1 %vm235_vm0, %v488_v53 }
 0x12f   :  { %v288_v55 = vpop.f32.mrf.mxu1 }
 0x130   :  { %v294_v56 = vmul.f32 %v288_v55, %v229_v54 }
 0x132   :  { %v677_v57 = vcvt.f32.s32 %v294_v56  ;;  %v680_v0 = vand.u32 2147483648, %v294_v56  ;;  %v675_v4 = vand.u32 2147483647, %v294_v56 }
 0x134   :  { %v678_v59 = vcvt.s32.f32 %v677_v57  ;;  %vm676_vm2 = vcmp.lt.f32.partialorder %v675_v4, 8388608.0 }
 0x136   :  { %v679_v63 = vand.u32 2147483647, %v678_v59 }
 0x137   :  { %v291_v60 = vpop.f32.mrf.mxu1 }
 0x138   :  { %v295_v61 = vmul.f32 %v291_v60, %v230_v58  ;;  %v681_v7 = vor.u32 %v680_v0, %v679_v63 }
 0x13a   :  { %v685_v62 = vcvt.f32.s32 %v295_v61  ;;  %v683_v3 = vand.u32 2147483647, %v295_v61  ;;  %v688_v6 = vand.u32 2147483648, %v295_v61  ;;  %v682_v15 = vsel %vm676_vm2, %v681_v7, %v294_v56 }
 0x13b   :  { %v298_v17 = vmul.f32 %v682_v15, %v227_v14 }
 0x13c   :  { %v686_v1 = vcvt.s32.f32 %v685_v62  ;;  %vm684_vm1 = vcmp.lt.f32.partialorder %v683_v3, 8388608.0 }
 0x13e   :  { %v687_v5 = vand.u32 2147483647, %v686_v1 }
 0x13f   :  { %v404_v8 = vpop.f32.mrf.mxu1 }
 0x140   :  { %v410_v9 = vmul.f32 %v404_v8, %v233_v2  ;;  %v689_v11 = vor.u32 %v688_v6, %v687_v5 }
 0x142   :  { %v693_v12 = vcvt.f32.s32 %v410_v9  ;;  %v690_v13 = vsel %vm684_vm1, %v689_v11, %v295_v61  ;;  %v696_v25 = vand.u32 2147483648, %v410_v9  ;;  %v691_v29 = vand.u32 2147483647, %v410_v9  ;;  %v225_v61 = vld [vmem:[#allocation10] sm:$0xff] }
 0x143   :  { %v299_v16 = vmul.f32 %v690_v13, %v228_v10  ;;  %350 = vmatpush.msra.mxu3 %v225_v61 }
 0x144   :  { %v694_v20 = vcvt.s32.f32 %v693_v12  ;;  %vm692_vm4 = vcmp.lt.f32.partialorder %v691_v29, 8388608.0 }
 0x145   :  { %320 = vmatpush.msra.mxu2 %v299_v16  ;;  %459 = vmatpush.msrb.mxu3 %v226_v37 }
 0x146   :  { %v695_v24 = vand.u32 2147483647, %v694_v20 }
 0x147   :  { %321 = vmatpush.msra.mxu2 %v298_v17  ;;  %v407_v21 = vpop.f32.mrf.mxu1  ;;  %460 = vmatpush.msrb.mxu3 %v225_v61 }
 0x148   :  { %v411_v22 = vmul.f32 %v407_v21, %v234_v18  ;;  %655 = vmatmul.msk.f32.vlgmr.msra.gmra.mxu2 %vm235_vm0, %v221_v19  ;;  %v697_v32 = vor.u32 %v696_v25, %v695_v24 }
 0x14a   :  { %v701_v23 = vcvt.f32.s32 %v411_v22  ;;  %v699_v28 = vand.u32 2147483647, %v411_v22  ;;  %v704_v30 = vand.u32 2147483648, %v411_v22  ;;  %v698_v41 = vsel %vm692_vm4, %v697_v32, %v410_v9 }
 0x14b   :  { %v414_v43 = vmul.f32 %v698_v41, %v231_v40 }
 0x14c   :  { %v702_v26 = vcvt.s32.f32 %v701_v23  ;;  %vm700_vm3 = vcmp.lt.f32.partialorder %v699_v28, 8388608.0 }
 0x14e   :  { %v703_v31 = vand.u32 2147483647, %v702_v26 }
 0x14f   :  { %v514_v33 = vpop.f32.mrf.mxu1 }
 0x150   :  { %v520_v34 = vmul.f32 %v514_v33, %v233_v2  ;;  %656 = vmatmul.msk.f32.gmra.mxu2 %vm235_vm0, %v222_v27  ;;  %v705_v36 = vor.u32 %v704_v30, %v703_v31 }
 0x152   :  { %v709_v38 = vcvt.f32.s32 %v520_v34  ;;  %v706_v39 = vsel %vm700_vm3, %v705_v36, %v411_v22  ;;  %v712_v49 = vand.u32 2147483648, %v520_v34  ;;  %v707_v51 = vand.u32 2147483647, %v520_v34 }
 0x153   :  { %v415_v42 = vmul.f32 %v706_v39, %v232_v35 }
 0x154   :  { %v710_v44 = vcvt.s32.f32 %v709_v38  ;;  %vm708_vm5 = vcmp.lt.f32.partialorder %v707_v51, 8388608.0 }
 0x155   :  { %430 = vmatpush.msrb.mxu2 %v415_v42 }
 0x156   :  { %v711_v47 = vand.u32 2147483647, %v710_v44 }
 0x157   :  { %431 = vmatpush.msrb.mxu2 %v414_v43  ;;  %v517_v45 = vpop.f32.mrf.mxu1 }
 0x158   :  { %v521_v46 = vmul.f32 %v517_v45, %v234_v18  ;;  %663 = vmatmul.msk.f32.vlgmr.msrb.gmra.mxu2 %vm235_vm0, %v221_v19  ;;  %v713_v53 = vor.u32 %v712_v49, %v711_v47 }
 0x15a   :  { %v717_v48 = vcvt.f32.s32 %v521_v46  ;;  %v715_v52 = vand.u32 2147483647, %v521_v46  ;;  %v720_v55 = vand.u32 2147483648, %v521_v46  ;;  %v714_v57 = vsel %vm708_vm5, %v713_v53, %v520_v34 }
 0x15b   :  { %v524_v60 = vmul.f32 %v714_v57, %v231_v40 }
 0x15c   :  { %v718_v50 = vcvt.s32.f32 %v717_v48  ;;  %vm716_vm6 = vcmp.lt.f32.partialorder %v715_v52, 8388608.0 }
 0x15e   :  { %v719_v54 = vand.u32 2147483647, %v718_v50 }
 0x160   :  { %v721_v56 = vor.u32 %v720_v55, %v719_v54  ;;  %664 = vmatmul.msk.f32.gmra.mxu2 %vm235_vm0, %v222_v27 }
 0x162   :  { %v722_v58 = vsel %vm716_vm6, %v721_v56, %v521_v46 }
 0x163   :  { %v525_v59 = vmul.f32 %v722_v58, %v232_v35 }
 0x165   :  { %540 = vmatpush.msra.mxu2 %v525_v59 }
 0x167   :  { %541 = vmatpush.msra.mxu2 %v524_v60 }
 0x168   :  { %671 = vmatmul.msk.f32.vlgmr.msra.gmra.mxu2 %vm235_vm0, %v221_v19 }
 0x170   :  { %672 = vmatmul.msk.f32.gmra.mxu2 %vm235_vm0, %v222_v27 }
 0x1cb   :  { %v323_v62 = vpop.f32.mrf.mxu2 }
 0x1cc   :  { %657 = vmatmul.msk.f32.vlgmr.msra.gmra.mxu3 %vm235_vm0, %v323_v62 }
 0x1cd   :  { %569 = vmatpush.msra.mxu3 %v226_v37 }
 0x1cf   :  { %570 = vmatpush.msra.mxu3 %v225_v61 }
 0x1d3   :  { %v326_v63 = vpop.f32.mrf.mxu2 }
 0x1d4   :  { %658 = vmatmul.msk.f32.gmra.mxu3 %vm235_vm0, %v326_v63 }
 0x1db   :  { %v433_v0 = vpop.f32.mrf.mxu2 }
 0x1dc   :  { %665 = vmatmul.msk.f32.vlgmr.msrb.gmra.mxu3 %vm235_vm0, %v433_v0 }
 0x1e3   :  { %v436_v1 = vpop.f32.mrf.mxu2 }
 0x1e4   :  { %666 = vmatmul.msk.f32.gmra.mxu3 %vm235_vm0, %v436_v1 }
 0x1eb   :  { %v543_v2 = vpop.f32.mrf.mxu2 }
 0x1ec   :  { %673 = vmatmul.msk.f32.vlgmr.msra.gmra.mxu3 %vm235_vm0, %v543_v2 }
 0x1f3   :  { %v546_v3 = vpop.f32.mrf.mxu2 }
 0x1f4   :  { %674 = vmatmul.msk.f32.gmra.mxu3 %vm235_vm0, %v546_v3 }
 0x24f   :  { %v352_v4 = vpop.f32.mrf.mxu3 }
 0x250   :  { %v353_v7 = vadd.f32 128.0, %v352_v4 }
 0x257   :  { %v355_v5 = vpop.f32.mrf.mxu3 }
 0x258   :  { %v356_v14 = vadd.f32 128.0, %v355_v5 }
 0x25f   :  { %v462_v6 = vpop.f32.mrf.mxu3 }
 0x260   :  { %v590_v8 = vmul.f32 1.772, %v462_v6  ;;  %v582_v19 = vmul.f32 0.344136, %v462_v6 }
 0x262   :  { %v592_v9 = vadd.f32 %v590_v8, %v353_v7  ;;  %v584_v26 = vsub.f32 %v353_v7, %v582_v19 }
 0x264   :  { %v615_v10 = vmax.f32 %v592_v9, 0.0 }
 0x266   :  { %v617_v11 = vmin.f32 %v615_v10, 255.0 }
 0x267   :  { %v465_v12 = vpop.f32.mrf.mxu3 }
 0x268   :  { %v757_v13 = vcvt.f32.s32 %v617_v11  ;;  %v591_v15 = vmul.f32 1.772, %v465_v12  ;;  %v755_v17 = vand.u32 2147483647, %v617_v11  ;;  %v760_v21 = vand.u32 2147483648, %v617_v11 }
 0x269   :  { %v583_v40 = vmul.f32 0.344136, %v465_v12 }
 0x26a   :  { %v758_v16 = vcvt.s32.f32 %v757_v13  ;;  %v593_v18 = vadd.f32 %v591_v15, %v356_v14  ;;  %vm756_vm7 = vcmp.lt.f32.partialorder %v755_v17, 8388608.0 }
 0x26b   :  { %v585_v49 = vsub.f32 %v356_v14, %v583_v40 }
 0x26c   :  { %v759_v20 = vand.u32 2147483647, %v758_v16  ;;  %v616_v22 = vmax.f32 %v593_v18, 0.0 }
 0x26e   :  { %v761_v23 = vor.u32 %v760_v21, %v759_v20  ;;  %v618_v24 = vmin.f32 %v616_v22, 255.0 }
 0x26f   :  { %v572_v25 = vpop.f32.mrf.mxu3 }
 0x270   :  { %v762_v27 = vsel %vm756_vm7, %v761_v23, %v617_v11  ;;  %v578_v28 = vmul.f32 1.402, %v572_v25  ;;  %v586_v29 = vmul.f32 0.714136, %v572_v25  ;;  %v765_v31 = vcvt.f32.s32 %v618_v24 }
 0x271   :  { %v621_v30 = vmul.f32 0.003921569, %v762_v27  ;;  %v763_v35 = vand.u32 2147483647, %v618_v24  ;;  %v768_v39 = vand.u32 2147483648, %v618_v24 }
 0x272   :  { %v580_v32 = vadd.f32 %v578_v28, %v353_v7  ;;  %v588_v33 = vsub.f32 %v584_v26, %v586_v29  ;;  %v766_v34 = vcvt.s32.f32 %v765_v31 }
 0x273   :  { %624 = vst.msk [vmem:[#allocation17 + $0x20] sm:$0xff] %vm235_vm0, %v621_v30  ;;  %vm764_vm8 = vcmp.lt.f32.partialorder %v763_v35, 8388608.0 }
 0x274   :  { %v594_v36 = vmax.f32 %v580_v32, 0.0  ;;  %v604_v37 = vmax.f32 %v588_v33, 0.0  ;;  %v767_v38 = vand.u32 2147483647, %v766_v34 }
 0x276   :  { %v596_v41 = vmin.f32 %v594_v36, 255.0  ;;  %v606_v42 = vmin.f32 %v604_v37, 255.0  ;;  %v769_v43 = vor.u32 %v768_v39, %v767_v38 }
 0x277   :  { %v575_v44 = vpop.f32.mrf.mxu3 }
 0x278   :  { %v725_v45 = vcvt.f32.s32 %v596_v41  ;;  %v770_v46 = vsel %vm764_vm8, %v769_v43, %v618_v24  ;;  %v741_v47 = vcvt.f32.s32 %v606_v42  ;;  %v579_v48 = vmul.f32 1.402, %v575_v44 }
 0x279   :  { %v622_v50 = vmul.f32 0.003921569, %v770_v46  ;;  %v723_v52 = vand.u32 2147483647, %v596_v41  ;;  %v587_v55 = vmul.f32 0.714136, %v575_v44 }
 0x27a   :  { %v726_v51 = vcvt.s32.f32 %v725_v45  ;;  %v742_v53 = vcvt.s32.f32 %v741_v47  ;;  %v581_v54 = vadd.f32 %v579_v48, %v356_v14  ;;  %v728_v57 = vand.u32 2147483648, %v596_v41 }
 0x27b   :  { %625 = vst.msk [vmem:[#allocation17 + $0x28] sm:$0xff] %vm235_vm0, %v622_v50  ;;  %v739_v58 = vand.u32 2147483647, %v606_v42  ;;  %v744_v60 = vand.u32 2147483648, %v606_v42  ;;  %v589_v61 = vsub.f32 %v585_v49, %v587_v55  ;;  %vm724_vm9 = vcmp.lt.f32.partialorder %v723_v52, 8388608.0 }
 0x27c   :  { %v727_v56 = vand.u32 2147483647, %v726_v51  ;;  %v743_v59 = vand.u32 2147483647, %v742_v53  ;;  %v595_v62 = vmax.f32 %v581_v54, 0.0 }
 0x27d   :  { %v605_v2 = vmax.f32 %v589_v61, 0.0  ;;  %vm740_vm10 = vcmp.lt.f32.partialorder %v739_v58, 8388608.0 }
 0x27e   :  { %v729_v63 = vor.u32 %v728_v57, %v727_v56  ;;  %v745_v0 = vor.u32 %v744_v60, %v743_v59  ;;  %v597_v1 = vmin.f32 %v595_v62, 255.0 }
 0x27f   :  { %v607_v8 = vmin.f32 %v605_v2, 255.0 }
 0x280   :  { %v730_v3 = vsel %vm724_vm9, %v729_v63, %v596_v41  ;;  %v746_v5 = vsel %vm740_vm10, %v745_v0, %v606_v42  ;;  %v733_v6 = vcvt.f32.s32 %v597_v1  ;;  %v731_v10 = vand.u32 2147483647, %v597_v1 }
 0x281   :  { %v600_v4 = vmul.f32 0.003921569, %v730_v3  ;;  %v610_v7 = vmul.f32 0.003921569, %v746_v5  ;;  %v749_v11 = vcvt.f32.s32 %v607_v8  ;;  %v736_v13 = vand.u32 2147483648, %v597_v1 }
 0x282   :  { %v734_v9 = vcvt.s32.f32 %v733_v6  ;;  %v747_v16 = vand.u32 2147483647, %v607_v8  ;;  %vm732_vm11 = vcmp.lt.f32.partialorder %v731_v10, 8388608.0  ;;  %v752_v18 = vand.u32 2147483648, %v607_v8 }
 0x283   :  { %602 = vst.msk [vmem:[#allocation17] sm:$0xff] %vm235_vm0, %v600_v4  ;;  %v750_v14 = vcvt.s32.f32 %v749_v11 }
 0x284   :  { %613 = vst.msk [vmem:[#allocation17 + $0x10] sm:$0xff] %vm235_vm0, %v610_v7  ;;  %v735_v12 = vand.u32 2147483647, %v734_v9  ;;  %vm748_vm12 = vcmp.lt.f32.partialorder %v747_v16, 8388608.0 }
 0x285   :  { %v751_v17 = vand.u32 2147483647, %v750_v14 }
 0x286   :  { %v737_v15 = vor.u32 %v736_v13, %v735_v12 }
 0x287   :  { %v753_v21 = vor.u32 %v752_v18, %v751_v17 }
 0x288   :  { %v738_v19 = vsel %vm732_vm11, %v737_v15, %v597_v1 }
 0x289   :  { %v601_v20 = vmul.f32 0.003921569, %v738_v19  ;;  %v754_v22 = vsel %vm748_vm12, %v753_v21, %v607_v8 }
 0x28a   :  { %v611_v23 = vmul.f32 0.003921569, %v754_v22 }
 0x28b   :  { %603 = vst.msk [vmem:[#allocation17 + $0x8] sm:$0xff] %vm235_vm0, %v601_v20 }
 0x28c   :  { %614 = vst.msk [vmem:[#allocation17 + $0x18] sm:$0xff] %vm235_vm0, %v611_v23 }
 0x28d   :  { %638 = dma.vmem_to_hbm [thread:$0]  %s631_s27, 768, %s633_s29, [#allocation4], %s1036_s17, %s1036_s17, %s1037_s18  }
 0x28e   :  { %1033 = dma.done.wait [#allocation4], 768  }
 0x28f   :  { %1034 = vsyncadd [#allocation4], 4294966528 }
 0x290   :  { %643 = vsyncpa [#allocation3], 1 }
 0x291   :  { %644 = vsyncpa [#allocation6], 1 }
 0x292   :  { %645 = vsyncpa [#allocation9], 1 }
 0x293   :  { %646 = vsyncpa [#allocation12], 1 }
 0x294   :  { %647 = vsyncpa [#allocation15], 1 }
 0x295   :  { %648 = vsyncpa [#allocation4], 1 }

</bundles_post_ra>
